<compile_context>
chip_gen: v6e
topology: v6e:2x2x1
jax: 0.10.0
libtpu: 0.0.40
codegen_flags: <defaults>
</compile_context>

<pallas_src>
import math
from functools import partial

import jax
import jax.numpy as jnp
from jax import lax
from jax.experimental import pallas as pl
from jax.experimental.pallas import tpu as pltpu  # noqa: F401  (TPU backend import)


def _time_embedding_kernel(t_ref, w_ref, b_ref, out_ref, *, half_dim: int):
    H = half_dim
    scale = math.log(10000.0) / (H - 1)                     # python compile-time constant

    # --- sinusoidal embedding in one transcendental pass over 2H lanes ------
    #   lanes [0, H)  -> sin(t * f_k)
    #   lanes [H, 2H) -> sin(t * f_{k-H} + pi/2) == cos(t * f_{k-H})
    lane = lax.broadcasted_iota(jnp.int32, (1, 2 * H), 1)
    k = jnp.where(lane >= H, lane - H, lane).astype(jnp.float32)
    freq = jnp.exp(k * (-scale))                            # (1, 2H), EUP exp
    phase = jnp.where(lane >= H, 0.5 * math.pi, 0.0).astype(jnp.float32)

    t = t_ref[...]                                          # (B, 1) f32
    emb = jnp.sin(t * freq + phase)                         # (B, 2H) f32

    # --- unpack fused weight / bias operands (static, row-aligned slices) ---
    w1 = w_ref[: 2 * H, :]                                  # (2H, C), row offset 0
    w2 = w_ref[2 * H :, :]                                  # (C,  C), row offset 2H (mult of 8)
    b = b_ref[...]                                          # (2, C)
    b1 = b[0:1, :]
    b2 = b[1:2, :]

    # --- lin1 -> Swish -> lin2, all f32 with f32 accumulation ----------------
    h = jnp.dot(emb, w1, preferred_element_type=jnp.float32) + b1       # (B, C)
    sig = 0.5 * jnp.tanh(0.5 * h) + 0.5                     # exact sigmoid, single EUP tanh
    h = h * sig                                             # Swish
    out = jnp.dot(h, w2, preferred_element_type=jnp.float32) + b2       # (B, C)
    out_ref[...] = out.astype(out_ref.dtype)


@partial(jax.jit, static_argnums=3)
def time_embedding(t2, w_packed, b_packed, n_channels):
    """t2: (B, 1) float32 (caller supplies this shape so the jit is one pallas_call).

    Returns (B, n_channels) float32.
    """
    B = t2.shape[0]
    C = n_channels
    H = n_channels // 8
    assert H >= 2, "n_channels must be >= 16 (half_dim - 1 would be zero)"

    full = lambda shape: pl.BlockSpec(shape, lambda: (0,) * len(shape))
    kernel = partial(_time_embedding_kernel, half_dim=H)

    # TODO(synk): for training-sized batches on v7x, add a 1-D "parallel" grid over B
    # (row tiles multiple of 8) so both TensorCores are used; grid=() is optimal at B=8.
    return pl.pallas_call(
        kernel,
        out_shape=jax.ShapeDtypeStruct((B, C), jnp.float32),
        grid=(),
        in_specs=[
            full((B, 1)),
            full((2 * H + C, C)),
            full((2, C)),
        ],
        out_specs=full((B, C)),
    )(t2, w_packed, b_packed)


def init_params(key, n_channels):
    """Synthetic init matching nn.Linear shapes, packed for the kernel.

    lin1: Linear(n_channels // 4, n_channels) -> weight^T rows [0, 2H)
    lin2: Linear(n_channels, n_channels)      -> weight^T rows [2H, 2H + C)
    Biases stacked into one (2, C) array. Everything f32.
    """
    C = n_channels
    E = n_channels // 4                                      # = 2 * half_dim

    k1, k2, k3, k4 = jax.random.split(key, 4)
    bound1 = 1.0 / math.sqrt(E)
    bound2 = 1.0 / math.sqrt(C)

    w1 = jax.random.uniform(k1, (E, C), jnp.float32, -bound1, bound1)
    b1 = jax.random.uniform(k2, (C,), jnp.float32, -bound1, bound1)
    w2 = jax.random.uniform(k3, (C, C), jnp.float32, -bound2, bound2)
    b2 = jax.random.uniform(k4, (C,), jnp.float32, -bound2, bound2)

    w_packed = jnp.concatenate([w1, w2], axis=0)             # (E + C, C)
    b_packed = jnp.stack([b1, b2], axis=0)                   # (2, C)
    return w_packed, b_packed


def time_embedding_ref(t2, w_packed, b_packed, n_channels):
    """Pure-JAX reference mirroring the PyTorch forward on the packed params."""
    H = n_channels // 8
    E = n_channels // 4
    scale = math.log(10000.0) / (H - 1)
    freq = jnp.exp(jnp.arange(H, dtype=jnp.float32) * -scale)
    emb = t2.reshape(-1, 1) * freq[None, :]
    emb = jnp.concatenate([jnp.sin(emb), jnp.cos(emb)], axis=1)
    w1, w2 = w_packed[:E], w_packed[E:]
    b1, b2 = b_packed[0], b_packed[1]
    h = emb @ w1 + b1
    h = h * jax.nn.sigmoid(h)
    return h @ w2 + b2


if __name__ == "__main__":
    n_channels = 128            # half_dim = 16, lin1: 32 -> 128, lin2: 128 -> 128
    batch = 8

    key = jax.random.PRNGKey(0)
    k_t, k_p = jax.random.split(key)
    t = jax.random.uniform(k_t, (batch, 1), jnp.float32, 0.0, 1000.0)
    w_packed, b_packed = init_params(k_p, n_channels)

    out = time_embedding(t, w_packed, b_packed, n_channels)
    out = jax.block_until_ready(out)

    ref = time_embedding_ref(t, w_packed, b_packed, n_channels)
    assert out.shape == (batch, n_channels)
    # f32 throughout + exact sigmoid -> only residual difference is MXU f32 matmul
    # pass precision; comfortably within 1e-2.
    assert jnp.allclose(out, ref, atol=1e-2, rtol=1e-2), "mismatch vs reference"

    print("KERNEL_OK")
</pallas_src>

<mosaic_0001>
module attributes {stable_mosaic.version = 11 : i64} {
  func.func @_time_embedding_kernel(%arg0: memref<8x1xf32, #tpu.memory_space<vmem>>, %arg1: memref<160x128xf32, #tpu.memory_space<vmem>>, %arg2: memref<2x128xf32, #tpu.memory_space<vmem>>, %arg3: memref<8x128xf32, #tpu.memory_space<vmem>>) attributes {dimension_semantics = [], scalar_prefetch = 0 : i64, scratch_operands = 0 : i64, tpu.core_type = #tpu.core_type<tc>} {
    %0 = tpu.iota {dimensions = array<i32: 1>} : vector<1x32xi32>
    %c16_i32 = arith.constant 16 : i32
    %1 = vector.broadcast %c16_i32 : i32 to vector<1x32xi32>
    %2 = arith.cmpi sge, %0, %1 : vector<1x32xi32>
    %c16_i32_0 = arith.constant 16 : i32
    %3 = vector.broadcast %c16_i32_0 : i32 to vector<1x32xi32>
    %4 = arith.subi %0, %3 : vector<1x32xi32>
    %5 = arith.select %2, %4, %0 : vector<1x32xi1>, vector<1x32xi32>
    %6 = arith.sitofp %5 : vector<1x32xi32> to vector<1x32xf32>
    %cst = arith.constant -0.614022672 : f32
    %7 = vector.broadcast %cst : f32 to vector<1x32xf32>
    %8 = arith.mulf %6, %7 : vector<1x32xf32>
    %9 = math.exp %8 : vector<1x32xf32>
    %c16_i32_1 = arith.constant 16 : i32
    %10 = vector.broadcast %c16_i32_1 : i32 to vector<1x32xi32>
    %11 = arith.cmpi sge, %0, %10 : vector<1x32xi32>
    %cst_2 = arith.constant 1.57079637 : f32
    %cst_3 = arith.constant 0.000000e+00 : f32
    %12 = vector.broadcast %cst_2 : f32 to vector<1x32xf32>
    %13 = vector.broadcast %cst_3 : f32 to vector<1x32xf32>
    %14 = arith.select %11, %12, %13 : vector<1x32xi1>, vector<1x32xf32>
    %c0 = arith.constant 0 : index
    %c0_4 = arith.constant 0 : index
    %15 = vector.load %arg0[%c0, %c0_4] : memref<8x1xf32, #tpu.memory_space<vmem>>, vector<8x1xf32>
    %16 = vector.broadcast %15 : vector<8x1xf32> to vector<8x32xf32>
    %17 = vector.broadcast %9 : vector<1x32xf32> to vector<8x32xf32>
    %18 = arith.mulf %16, %17 : vector<8x32xf32>
    %19 = vector.broadcast %14 : vector<1x32xf32> to vector<8x32xf32>
    %20 = arith.addf %18, %19 : vector<8x32xf32>
    %21 = math.sin %20 : vector<8x32xf32>
    %c0_5 = arith.constant 0 : index
    %c0_6 = arith.constant 0 : index
    %22 = vector.load %arg1[%c0_5, %c0_6] : memref<160x128xf32, #tpu.memory_space<vmem>>, vector<32x128xf32>
    %c32 = arith.constant 32 : index
    %c0_7 = arith.constant 0 : index
    %23 = vector.load %arg1[%c32, %c0_7] : memref<160x128xf32, #tpu.memory_space<vmem>>, vector<128x128xf32>
    %c0_8 = arith.constant 0 : index
    %c0_9 = arith.constant 0 : index
    %24 = vector.load %arg2[%c0_8, %c0_9] : memref<2x128xf32, #tpu.memory_space<vmem>>, vector<2x128xf32>
    %25 = vector.extract_strided_slice %24 {offsets = [0, 0], sizes = [1, 128], strides = [1, 1]} : vector<2x128xf32> to vector<1x128xf32>
    %26 = vector.extract_strided_slice %24 {offsets = [1, 0], sizes = [1, 128], strides = [1, 1]} : vector<2x128xf32> to vector<1x128xf32>
    %cst_10 = arith.constant dense<0.000000e+00> : vector<8x128xf32>
    %27 = tpu.matmul %21, %22, %cst_10 {dimension_numbers = #tpu.dot_dimension_numbers<[1], [0], [0], [1], [0, 0, 1, 1], [], []>} : vector<8x32xf32>, vector<32x128xf32>, vector<8x128xf32> -> vector<8x128xf32>
    %28 = vector.broadcast %25 : vector<1x128xf32> to vector<8x128xf32>
    %29 = arith.addf %27, %28 : vector<8x128xf32>
    %cst_11 = arith.constant 5.000000e-01 : f32
    %30 = vector.broadcast %cst_11 : f32 to vector<8x128xf32>
    %31 = arith.mulf %30, %29 : vector<8x128xf32>
    %32 = math.tanh %31 : vector<8x128xf32>
    %cst_12 = arith.constant 5.000000e-01 : f32
    %33 = vector.broadcast %cst_12 : f32 to vector<8x128xf32>
    %34 = arith.mulf %33, %32 : vector<8x128xf32>
    %cst_13 = arith.constant 5.000000e-01 : f32
    %35 = vector.broadcast %cst_13 : f32 to vector<8x128xf32>
    %36 = arith.addf %34, %35 : vector<8x128xf32>
    %37 = arith.mulf %29, %36 : vector<8x128xf32>
    %cst_14 = arith.constant dense<0.000000e+00> : vector<8x128xf32>
    %38 = tpu.matmul %37, %23, %cst_14 {dimension_numbers = #tpu.dot_dimension_numbers<[1], [0], [0], [1], [0, 0, 1, 1], [], []>} : vector<8x128xf32>, vector<128x128xf32>, vector<8x128xf32> -> vector<8x128xf32>
    %39 = vector.broadcast %26 : vector<1x128xf32> to vector<8x128xf32>
    %40 = arith.addf %38, %39 : vector<8x128xf32>
    %c0_15 = arith.constant 0 : index
    %c0_16 = arith.constant 0 : index
    %41 = vector.load %arg3[%c0_15, %c0_16] : memref<8x128xf32, #tpu.memory_space<vmem>>, vector<8x128xf32>
    tpu.vector_store %arg3[%c0_15, %c0_16], %40 {strides = array<i32>} : memref<8x128xf32, #tpu.memory_space<vmem>>, vector<8x128xf32>,
    return
  }
}

</mosaic_0001>

<bundles_post_ra>
// kernel: time_embedding.1
= control target key start
LH: loop header
LB: loop body
LE: loop exit
PB: predicated region body
PF: predicated region fallthrough
CT: control target
= control target key end

     0   :  { %8 = vsyncpa [#allocation3], 0  ;;  %s580_s0 = inlined_call_operand.vmem [shape: f32[8,1], index: 0, kind: input, shape index: {}]   ;;  %s581_s1 = inlined_call_operand.hbm [shape: f32[160,128], index: 1, kind: input, shape index: {}]   ;;  %s582_s2 = inlined_call_operand.vmem [shape: f32[2,128], index: 2, kind: input, shape index: {}]   ;;  %s583_s3 = inlined_call_operand.hbm [shape: f32[8,128], index: 3, kind: output, shape index: {}]  }
   0x1   :  { %9 = vsyncpa [#allocation4], 0  ;;  %s489_s12 = smov [#allocation2]  }
   0x2   :  { %s17_s13 = sshll.u32 %s489_s12, 4  ;;  %s18_s13 = int_to_ptr.vmem [resolvable:$true] %s17_s13 }
   0x3   :  { %s453_s14 = scalar_lea.vmem %s18_s13, 2560  ;;  %p458_p1 = scmp.lt.s32.totalorder %s18_s13, %s18_s13 }
   0x4   :  { %p454_p0 = scmp.ne.s32.totalorder %s18_s13, %s453_s14  ;;  %p459_p2 = scmp.lt.s32.totalorder %s453_s14, %s453_s14 }
   0x6   :  { %p460_p3 = por %p459_p2, %p458_p1 }
   0x8   :  { %p461_p4 = pnand %p460_p3, %p454_p0 }
   0xa   :  { %464 = shalt.err (!%p461_p4)
}
   0xb   :  { %s490_s15 = smov 128   ;;  %s491_s16 = smov 8  }
   0xc   :  { %23 = dma.hbm_to_vmem [thread:$0]  %s581_s1, 2560, %s18_s13, [#allocation3], %s490_s15, %s490_s15, %s491_s16  }
   0xd   :  { %485 = dma.done.wait [#allocation3], 2560  }
   0xe   :  { %486 = vsyncadd [#allocation3], 4294964736  ;;  %v492_v0 = vmov 0   ;;  %v493_v1 = vmov 0.0   ;;  %v39_v2 = vld [vmem:[%s580_s0] sm:$0xff]  ;;  %v154_v3 = vld [vmem:[#allocation2 + $0x18] sm:$0xff]  ;;  %v29_v7 = vlaneseq }
   0xf   :  { %436 = vset.pattern.permute.xlu0 %v492_v0  ;;  %373 = vmatprep.subr.mxu0 %v493_v1  ;;  %v153_v4 = vld [vmem:[#allocation2 + $0x10] sm:$0xff]  ;;  %vm494_vm0 = vmmov 0   ;;  %v152_v5 = vld [vmem:[#allocation2 + $0x8] sm:$0xff]  ;;  %v151_v6 = vld [vmem:[#allocation2] sm:$0xff]  ;;  %v495_v33 = vmov 2102212464  }
  0x10   :  { %384 = vmatprep.subr.mxu1 %v493_v1  ;;  %42 = vperm.xlu0 %436, %v39_v2   ;;  %v170_v8 = vld [vmem:[#allocation2 + $0x98] sm:$0xff]  ;;  %v169_v9 = vld [vmem:[#allocation2 + $0x90] sm:$0xff]  ;;  %v30_v10 = vand.u32 127, %v29_v7  ;;  %v168_v11 = vld [vmem:[#allocation2 + $0x88] sm:$0xff]  ;;  %v496_v35 = vmov 920167782  }
  0x11   :  { %374 = vmatpush3.msra.mxu0 %v154_v3  ;;  %381 = vmatprep.mubr.msk.f32.mxu0 %vm494_vm0, %v493_v1  ;;  %v497_v39 = vmov 1326507024   ;;  %v498_v41 = vmov 683565275   ;;  %v499_v43 = vmov 2475754826  }
  0x12   :  { %375 = vmatprep.subr.mxu0 %v493_v1  ;;  %416 = vmatprep.mubr.msk.f32.mxu1 %vm494_vm0, %v493_v1  ;;  %v345_v12 = vadd.s32 4294967280, %v30_v10  ;;  %vm31_vm1 = vcmp.ge.s32.totalorder %v30_v10, 16  ;;  %v500_v46 = vmov 2131351028   ;;  %vm176_vm14 = vcmask 261120   ;;  %s501_s21 = smov [#allocation5]  }
  0x13   :  { %376 = vmatpush3.msra.mxu0 %v153_v4  ;;  %385 = vmatpush3.msra.mxu1 %v170_v8  ;;  %v38_v18 = vsel %vm31_vm1, 1.5707964, %v493_v1  ;;  %s336_s22 = sshll.u32 %s501_s21, 4  ;;  %s337_s22 = int_to_ptr.vmem [resolvable:$true] %s336_s22 }
  0x14   :  { %377 = vmatprep.subr.mxu0 %v493_v1  ;;  %386 = vmatprep.subr.mxu1 %v493_v1  ;;  %v33_v13 = vsel %vm31_vm1, %v345_v12, %v30_v10  ;;  %p470_p6 = scmp.lt.s32.totalorder %s337_s22, %s337_s22 }
  0x15   :  { %378 = vmatpush3.msra.mxu0 %v152_v5  ;;  %387 = vmatpush3.msra.mxu1 %v169_v9  ;;  %v34_v14 = vcvt.s32.f32 %v33_v13 }
  0x16   :  { %379 = vmatprep.subr.mxu0 %v493_v1  ;;  %388 = vmatprep.subr.mxu1 %v493_v1 }
  0x17   :  { %380 = vmatpush3.msra.mxu0 %v151_v6  ;;  %389 = vmatpush3.msra.mxu1 %v168_v11  ;;  %v35_v15 = vmul.f32 -0.6140227, %v34_v14 }
  0x18   :  { %390 = vmatprep.subr.mxu1 %v493_v1 }
  0x19   :  { %v36_v16 = vmul.f32 1.442695, %v35_v15 }
  0x1b   :  { %437 = vpow2.f32 %v36_v16 }
  0x28   :  { %v438_v17 = vpop.eup %437 }
  0x8b   :  { %v43_v19 = vpop.permute.xlu0 %42 }
  0x8c   :  { %v45_v20 = vmul.f32 %v438_v17, %v43_v19 }
  0x8e   :  { %v540_v21 = vadd.f32 %v45_v20, %v38_v18 }
  0x90   :  { %v50_v22 = vand.u32 2139095040, %v540_v21  ;;  %v47_v23 = vand.u32 2147483647, %v540_v21  ;;  %vm49_vm9 = vcmp.lt.s32.totalorder %v540_v21, 0  ;;  %vm139_vm15 = vweird.f32 %v540_v21 }
  0x92   :  { %v51_v24 = vshrl.u32 %v50_v22, 23  ;;  %v54_v26 = vand.u32 8388607, %v47_v23  ;;  %vm48_vm10 = vcmp.le.f32.partialorder %v47_v23, 0.7853982 }
  0x94   :  { %v346_v25 = vadd.s32 4294967169, %v51_v24  ;;  %v55_v29 = vor.u32 8388608, %v54_v26 }
  0x96   :  { %v57_v27 = vadd.s32 1, %v346_v25  ;;  %v95_v37 = vshll.u32 %v55_v29, 8 }
  0x98   :  { %vm58_vm2 = vcmp.gt.s32.totalorder %v57_v27, 0 }
  0x99   :  { %v59_v28 = vsel %vm58_vm2, %v57_v27, 0 }
  0x9a   :  { %v61_v30 = vand.u32 31, %v59_v28  ;;  %v60_v31 = vshrl.u32 %v59_v28, 5 }
  0x9c   :  { %v62_v32 = vsub.s32 32, %v61_v30  ;;  %v73_v34 = vshll.u32 %v495_v33, %v61_v30  ;;  %v76_v36 = vshll.u32 %v496_v35, %v61_v30  ;;  %v64_v42 = vshll.u32 %v498_v41, %v61_v30 }
  0x9d   :  { %v67_v45 = vshll.u32 %v499_v43, %v61_v30  ;;  %v70_v48 = vshll.u32 %v500_v46, %v61_v30  ;;  %vm82_vm3 = vcmp.lt.s32.totalorder %v60_v31, 4  ;;  %vm79_vm4 = vcmp.lt.s32.totalorder %v60_v31, 1 }
  0x9e   :  { %v74_v38 = vshrl.u32 %v496_v35, %v62_v32  ;;  %v77_v40 = vshrl.u32 %v497_v39, %v62_v32  ;;  %v65_v44 = vshrl.u32 %v499_v43, %v62_v32  ;;  %v68_v47 = vshrl.u32 %v500_v46, %v62_v32 }
  0x9f   :  { %v71_v49 = vshrl.u32 %v495_v33, %v62_v32  ;;  %v63_v53 = vshrl.u32 %v498_v41, %v62_v32  ;;  %vm80_vm5 = vcmp.lt.s32.totalorder %v60_v31, 2  ;;  %vm81_vm6 = vcmp.lt.s32.totalorder %v60_v31, 3 }
  0xa0   :  { %v75_v50 = vor.u32 %v74_v38, %v73_v34  ;;  %v78_v51 = vor.u32 %v77_v40, %v76_v36  ;;  %v66_v52 = vor.u32 %v65_v44, %v64_v42  ;;  %v69_v54 = vor.u32 %v68_v47, %v67_v45 }
  0xa1   :  { %v72_v55 = vor.u32 %v71_v49, %v70_v48 }
  0xa2   :  { %v88_v56 = vsel %vm82_vm3, %v75_v50, 920167782  ;;  %v92_v57 = vsel %vm82_vm3, %v78_v51, 1326507024  ;;  %v87_v59 = vsel %vm79_vm4, %v66_v52, %v69_v54  ;;  %v83_v62 = vsel %vm79_vm4, %v63_v53, %v66_v52  ;;  %v167_v52 = vld [vmem:[#allocation2 + $0x80] sm:$0xff]  ;;  %v166_v53 = vld [vmem:[#allocation2 + $0x78] sm:$0xff] }
  0xa3   :  { %v84_v58 = vsel %vm82_vm3, %v72_v55, 2102212464  ;;  %v89_v60 = vsel %vm81_vm6, %v72_v55, %v88_v56  ;;  %v91_v61 = vsel %vm79_vm4, %v69_v54, %v72_v55  ;;  %v93_v2 = vsel %vm81_vm6, %v75_v50, %v92_v57  ;;  %391 = vmatpush3.msra.mxu1 %v167_v52  ;;  %v164_v55 = vld [vmem:[#allocation2 + $0x68] sm:$0xff]  ;;  %v162_v56 = vld [vmem:[#allocation2 + $0x58] sm:$0xff]  ;;  %v161_v57 = vld [vmem:[#allocation2 + $0x50] sm:$0xff] }
  0xa4   :  { %v85_v63 = vsel %vm81_vm6, %v69_v54, %v84_v58  ;;  %v90_v0 = vsel %vm80_vm5, %v87_v59, %v89_v60  ;;  %v94_v3 = vsel %vm80_vm5, %v91_v61, %v93_v2  ;;  %392 = vmatprep.subr.mxu1 %v493_v1  ;;  %v165_v54 = vld [vmem:[#allocation2 + $0x70] sm:$0xff]  ;;  %v160_v58 = vld [vmem:[#allocation2 + $0x48] sm:$0xff]  ;;  %v159_v59 = vld [vmem:[#allocation2 + $0x40] sm:$0xff] }
  0xa5   :  { %v546_v4 = vmul.u32.u64.low %v95_v37, %v90_v0  ;;  %v547_v5 = vmul.u32.u64.high %v95_v37, %v90_v0, %v546_v4  ;;  %v549_v6 = vmul.u32.u64.low %v95_v37, %v94_v3  ;;  %v550_v8 = vmul.u32.u64.high %v95_v37, %v94_v3, %v549_v6  ;;  %393 = vmatpush3.msra.mxu1 %v166_v53  ;;  %v158_v60 = vld [vmem:[#allocation2 + $0x38] sm:$0xff]  ;;  %v157_v61 = vld [vmem:[#allocation2 + $0x30] sm:$0xff]  ;;  %v171_v3 = vld [vmem:[%s582_s2] sm:$0x3]  ;;  %s465_s2 = scalar_lea.vmem %s337_s22, 128 }
  0xa6   :  { %v86_v9 = vsel %vm80_vm5, %v83_v62, %v85_v63  ;;  %394 = vmatprep.subr.mxu1 %v493_v1  ;;  %v156_v62 = vld [vmem:[#allocation2 + $0x28] sm:$0xff]  ;;  %v155_v63 = vld [vmem:[#allocation2 + $0x20] sm:$0xff]  ;;  %v173_v0 = vshrl.u32 %v29_v7, 7  ;;  %p466_p5 = scmp.ne.s32.totalorder %s337_s22, %s465_s2  ;;  %p471_p7 = scmp.lt.s32.totalorder %s465_s2, %s465_s2 }
  0xa7   :  { %v105_v10 = vadd.s32 1, %v547_v5  ;;  %v102_v11 = vmul.u32 %v95_v37, %v86_v9  ;;  %vm104_vm7 = vc.u32 %v550_v8, %v546_v4  ;;  %v103_v25 = vadd.s32 %v546_v4, %v550_v8  ;;  %395 = vmatpush3.msra.mxu1 %v165_v54 }
  0xa8   :  { %396 = vmatprep.subr.mxu1 %v493_v1  ;;  %v174_v2 = vsub.s32 0, %v173_v0  ;;  %p472_p8 = por %p471_p7, %p470_p6 }
  0xa9   :  { %v106_v12 = vsel %vm104_vm7, %v105_v10, %v547_v5  ;;  %397 = vmatpush3.msra.mxu1 %v164_v55 }
  0xaa   :  { %v107_v13 = vadd.s32 %v106_v12, %v102_v11  ;;  %398 = vmatprep.subr.mxu1 %v493_v1  ;;  %v175_v4 = vrot.slane %v171_v3, %v174_v2  ;;  %p473_p9 = pnand %p472_p8, %p466_p5 }
  0xac   :  { %v108_v14 = vadd.s32 536870912, %v107_v13 }
  0xae   :  { %v109_v15 = vshrl.u32 %v108_v14, 30 }
  0xb0   :  { %v110_v16 = vshll.u32 %v109_v15, 30  ;;  %v133_v38 = vsub.s32 4, %v109_v15 }
  0xb2   :  { %v111_v17 = vsub.s32 %v107_v13, %v110_v16  ;;  %v134_v41 = vsel %vm49_vm9, %v133_v38, %v109_v15 }
  0xb3   :  { %v136_v42 = vsel %vm48_vm10, 0, %v134_v41 }
  0xb4   :  { %v113_v18 = vsub.s32 0, %v111_v17  ;;  %v140_v43 = vadd.s32 3, %v136_v42 }
  0xb6   :  { %v347_v19 = vmin.u32 %v113_v18, %v111_v17  ;;  %v141_v44 = vand.u32 3, %v140_v43 }
  0xb8   :  { %v115_v20 = vclz %v347_v19  ;;  %vm146_vm11 = vcmp.eq.s32.totalorder %v141_v44, 2  ;;  %vm143_vm12 = vcmp.eq.s32.totalorder %v141_v44, 0  ;;  %vm142_vm13 = vcmp.lt.s32.totalorder %v141_v44, 2 }
  0xba   :  { %v348_v22 = vadd.s32 4294967294, %v115_v20 }
  0xbc   :  { %vm349_vm8 = vcmp.lt.s32.totalorder %v348_v22, 0 }
  0xbd   :  { %v118_v24 = vsel %vm349_vm8, 0, %v348_v22 }
  0xbe   :  { %v119_v26 = vsub.s32 32, %v118_v24  ;;  %v123_v27 = vsub.s32 4294967266, %v118_v24  ;;  %v120_v28 = vshll.u32 %v111_v17, %v118_v24 }
  0xc0   :  { %v121_v29 = vshrl.u32 %v103_v25, %v119_v26  ;;  %v124_v30 = vadd.s32 127, %v123_v27 }
  0xc2   :  { %v122_v31 = vor.u32 %v121_v29, %v120_v28  ;;  %v125_v32 = vshll.u32 %v124_v30, 23 }
  0xc4   :  { %v126_v33 = vor.u32 4788187, %v125_v32  ;;  %v129_v35 = vcvt.s32.f32 %v122_v31 }
  0xc6   :  { %v127_v34 = vand.u32 2147483647, %v126_v33 }
  0xc8   :  { %v130_v36 = vmul.f32 %v129_v35, %v127_v34 }
  0xca   :  { %v131_v37 = vxor.u32 2147483648, %v130_v36 }
  0xcc   :  { %v132_v39 = vsel %vm49_vm9, %v131_v37, %v130_v36 }
  0xcd   :  { %v135_v40 = vsel %vm48_vm10, %v540_v21, %v132_v39  ;;  %v163_v21 = vld [vmem:[#allocation2 + $0x60] sm:$0xff] }
  0xce   :  { %439 = vcosq.f32 %v135_v40  ;;  %399 = vmatpush3.msra.mxu1 %v163_v21 }
  0xcf   :  { %441 = vsinq.f32 %v135_v40  ;;  %400 = vmatprep.subr.mxu1 %v493_v1 }
  0xd0   :  { %401 = vmatpush3.msra.mxu1 %v162_v56 }
  0xd1   :  { %402 = vmatprep.subr.mxu1 %v493_v1 }
  0xd2   :  { %403 = vmatpush3.msra.mxu1 %v161_v57 }
  0xd3   :  { %404 = vmatprep.subr.mxu1 %v493_v1 }
  0xd4   :  { %405 = vmatpush3.msra.mxu1 %v160_v58 }
  0xd5   :  { %406 = vmatprep.subr.mxu1 %v493_v1 }
  0xd6   :  { %407 = vmatpush3.msra.mxu1 %v159_v59 }
  0xd7   :  { %408 = vmatprep.subr.mxu1 %v493_v1 }
  0xd8   :  { %409 = vmatpush3.msra.mxu1 %v158_v60 }
  0xd9   :  { %410 = vmatprep.subr.mxu1 %v493_v1 }
  0xda   :  { %411 = vmatpush3.msra.mxu1 %v157_v61 }
  0xdb   :  { %v440_v45 = vpop.eup %439  ;;  %412 = vmatprep.subr.mxu1 %v493_v1 }
  0xdc   :  { %v442_v46 = vpop.eup %441  ;;  %v147_v47 = vxor.u32 2147483648, %v440_v45  ;;  %413 = vmatpush3.msra.mxu1 %v156_v62 }
  0xdd   :  { %v144_v48 = vxor.u32 2147483648, %v442_v46  ;;  %414 = vmatprep.subr.mxu1 %v493_v1  ;;  %v257_v1 = vsub.s32 1, %v173_v0 }
  0xde   :  { %v148_v49 = vsel %vm146_vm11, %v147_v47, %v442_v46  ;;  %415 = vmatpush3.msra.mxu1 %v155_v63 }
  0xdf   :  { %v145_v50 = vsel %vm143_vm12, %v440_v45, %v144_v48  ;;  %v258_v14 = vrot.slane %v171_v3, %v257_v1 }
  0xe0   :  { %v149_v23 = vsel %vm142_vm13, %v145_v50, %v148_v49 }
  0xe1   :  { %v150_v51 = vsel %vm139_vm15, nan, %v149_v23 }
  0xe2   :  { %382 = vmatmul.mubr.msk.f32.vlgmr.msra.gmra.mxu0 %vm176_vm14, %v150_v51 }
 0x1a2   :  { %v246_v5 = vpop.f32.mrf.mxu0 }
 0x1a3   :  { %v247_v6 = vadd.f32 %v246_v5, %v175_v4 }
 0x1a4   :  { %v383_v8 = vpop.f32.mrf.mxu0 }
 0x1a5   :  { %v250_v9 = vmul.f32 0.5, %v247_v6 }
 0x1a7   :  { %443 = vtanh.f32 %v250_v9 }
 0x1b4   :  { %v444_v10 = vpop.eup %443 }
 0x1b5   :  { %v252_v11 = vmul.f32 0.5, %v444_v10 }
 0x1b7   :  { %v253_v12 = vadd.f32 0.5, %v252_v11 }
 0x1b9   :  { %v254_v13 = vmul.f32 %v253_v12, %v247_v6 }
 0x1bb   :  { %417 = vmatmul.mubr.f32.vlgmr.msra.gmra.mxu1 %v254_v13 }
 0x27b   :  { %v325_v7 = vpop.f32.mrf.mxu1 }
 0x27c   :  { %v326_v15 = vadd.f32 %v325_v7, %v258_v14 }
 0x27d   :  { %v418_v16 = vpop.f32.mrf.mxu1 }
 0x27e   :  { %329 = vst [vmem:[#allocation5] sm:$0xff] %v326_v15 }
 0x27f   :  { %476 = shalt.err (!%p473_p9)
}
 0x280   :  { %339 = dma.vmem_to_hbm [thread:$0]  %s337_s22, 128, %s583_s3, [#allocation4]  }
 0x281   :  { %487 = dma.done.wait [#allocation4], 128  }
 0x282   :  { %488 = vsyncadd [#allocation4], 4294967168 }
 0x283   :  { %343 = vsyncpa [#allocation3], 1 }
 0x284   :  { %344 = vsyncpa [#allocation4], 1 }

</bundles_post_ra>
